<compile_context>
chip_gen: v7x
topology: tpu7x:2x2x1
jax: 0.10.0
libtpu: 0.0.40
codegen_flags: <defaults>
</compile_context>

<pallas_src>
import jax
import jax.numpy as jnp
from jax.experimental import pallas as pl
from jax.experimental.pallas import tpu as pltpu

IN_FEATURES = 2
OUT_FEATURES = 1
LANES = 128                     # samples per packed row
ROW = IN_FEATURES * LANES       # 256 interleaved values per packed row
SUBLANES = 8                    # keep row blocks a multiple of 8 (sublane tile)


def logistic_kernel(x_ref, mhi_ref, mlo_ref, b_ref, o_ref):
    # x_ref:   (R, 256) VMEM  - 128 samples/row, lanes = interleaved (x0, x1)
    # mhi/mlo: (256, 128) VMEM bf16 - de-interleave + 0.5*w matrix, hi/lo split
    # b_ref:   (1,) SMEM f32  - 0.5 * bias
    # o_ref:   (R, 128) VMEM  - one sigmoid per lane (dense, unmasked stores)
    x = x_ref[...].astype(jnp.float32)
    # Exact hi/lo split so bf16 MXU passes lose no f32 input precision.
    x_hi = x.astype(jnp.bfloat16)
    x_lo = (x - x_hi.astype(jnp.float32)).astype(jnp.bfloat16)
    m_hi = mhi_ref[...]
    m_lo = mlo_ref[...]

    z = jnp.dot(x_hi, m_hi, preferred_element_type=jnp.float32)
    z = z + jnp.dot(x_lo, m_hi, preferred_element_type=jnp.float32)
    z = z + jnp.dot(x_hi, m_lo, preferred_element_type=jnp.float32)
    z = z + jnp.dot(x_lo, m_lo, preferred_element_type=jnp.float32)
    z = z + b_ref[0]                     # z = 0.5 * (x @ W^T + b)

    # sigmoid(2z) = 0.5*tanh(z) + 0.5  (tanh on the EUP, no VALU divide)
    o_ref[...] = (0.5 * jnp.tanh(z) + 0.5).astype(o_ref.dtype)


def logistic_forward(x, w, b, *, block_rows=4096):
    """x: (batch, 2); w: (1, 2); b: (1,).  Returns sigmoid(x @ w.T + b), (batch, 1)."""
    batch = x.shape[0]
    assert x.shape[1] == IN_FEATURES and w.shape == (OUT_FEATURES, IN_FEATURES)

    # Pack 128 samples per row; keep rows a multiple of 8 so blocks are always
    # (8k, 256)/(8k, 128) aligned.  The pad copy only happens when batch is not
    # already a multiple of 1024 samples (the common large-batch case is free).
    row_align = SUBLANES * LANES                       # 1024 samples
    padded_batch = pl.cdiv(batch, row_align) * row_align
    rows = padded_batch // LANES                       # multiple of 8

    x_flat = x.reshape(-1)                             # free, row-major view
    if padded_batch != batch:
        x_flat = jnp.pad(x_flat, (0, (padded_batch - batch) * IN_FEATURES))
    x2 = x_flat.reshape(rows, ROW)                     # free reshape, no transpose

    # De-interleave + weight matrix with the tanh-form 0.5 folded in:
    # M[k, j] = 0.5 * w[k % 2] if k // 2 == j else 0.
    w_half = (0.5 * w.reshape(IN_FEATURES)).astype(jnp.float32)
    k = jnp.arange(ROW)
    j = jnp.arange(LANES)
    m = jnp.where((k[:, None] // IN_FEATURES) == j[None, :],
                  w_half[k % IN_FEATURES][:, None], 0.0).astype(jnp.float32)
    # Exact bf16 hi/lo split of the (tiny) weight matrix, done once host-side.
    m_hi = m.astype(jnp.bfloat16)
    m_lo = (m - m_hi.astype(jnp.float32)).astype(jnp.bfloat16)

    b_half = (0.5 * b.reshape(OUT_FEATURES)).astype(jnp.float32)

    r_blk = min(block_rows, rows)                      # rows per grid step (mult of 8)
    grid = pl.cdiv(rows, r_blk)

    out2 = pl.pallas_call(
        logistic_kernel,
        out_shape=jax.ShapeDtypeStruct((rows, LANES), x.dtype),
        grid_spec=pl.GridSpec(
            grid=(grid,),
            in_specs=[
                pl.BlockSpec((r_blk, ROW), lambda i: (i, 0)),          # activations
                pl.BlockSpec((ROW, LANES), lambda i: (0, 0)),          # M_hi (resident)
                pl.BlockSpec((ROW, LANES), lambda i: (0, 0)),          # M_lo (resident)
                pl.BlockSpec(memory_space=pltpu.MemorySpace.SMEM),     # 0.5*b scalar
            ],
            out_specs=pl.BlockSpec((r_blk, LANES), lambda i: (i, 0)),
        ),
        compiler_params=pltpu.CompilerParams(
            dimension_semantics=("parallel",),         # shard batch blocks across TCs
            vmem_limit_bytes=32 * 1024 * 1024,         # ~12.3 MiB used; safe on v5e-v7x
        ),
    )(x2, m_hi, m_lo, b_half)

    # Free reshape; the slice only copies (output bytes) when batch was padded.
    y = out2.reshape(padded_batch)[:batch]
    return y.reshape(batch, OUT_FEATURES)


if __name__ == "__main__":
    key = jax.random.PRNGKey(0)
    kx, kw, kb = jax.random.split(key, 3)

    batch = 8
    bound = 1.0 / jnp.sqrt(jnp.float32(IN_FEATURES))   # torch.nn.Linear init range
    x = jax.random.normal(kx, (batch, IN_FEATURES), dtype=jnp.float32)
    w = jax.random.uniform(kw, (OUT_FEATURES, IN_FEATURES),
                           minval=-bound, maxval=bound, dtype=jnp.float32)
    b = jax.random.uniform(kb, (OUT_FEATURES,),
                           minval=-bound, maxval=bound, dtype=jnp.float32)

    y = jax.block_until_ready(logistic_forward(x, w, b))

    # Exact-f32 elementwise reference (no matmul-precision ambiguity in the ref).
    z_ref = x[:, 0:1] * w[0, 0] + x[:, 1:2] * w[0, 1] + b[0]
    y_ref = jax.nn.sigmoid(z_ref)
    assert y.shape == (batch, OUT_FEATURES)
    # The bf16 hi/lo MXU path carries <= ~2^-16 relative error on the
    # pre-activation; 1e-4 gives a comfortable margin over that bound.
    assert jnp.allclose(y, y_ref, atol=1e-4, rtol=1e-4), (
        "mismatch vs reference: max abs err "
        f"{float(jnp.max(jnp.abs(y - y_ref)))}")

    # Second check: ragged batch + multi-step grid (block_rows=8 -> 3 grid steps).
    batch2 = 2348
    x2_in = jax.random.normal(jax.random.PRNGKey(1), (batch2, IN_FEATURES),
                              dtype=jnp.float32)
    y2 = jax.block_until_ready(logistic_forward(x2_in, w, b, block_rows=8))
    z2_ref = x2_in[:, 0:1] * w[0, 0] + x2_in[:, 1:2] * w[0, 1] + b[0]
    y2_ref = jax.nn.sigmoid(z2_ref)
    assert y2.shape == (batch2, OUT_FEATURES)
    assert jnp.allclose(y2, y2_ref, atol=1e-4, rtol=1e-4), (
        "mismatch vs reference (ragged batch): max abs err "
        f"{float(jnp.max(jnp.abs(y2 - y2_ref)))}")

    print("KERNEL_OK")
</pallas_src>

<mosaic_0001>
module attributes {stable_mosaic.version = 11 : i64} {
  func.func @logistic_kernel(%arg0: i32, %arg1: memref<8x256xf32, #tpu.memory_space<vmem>>, %arg2: memref<256x128xbf16, #tpu.memory_space<vmem>>, %arg3: memref<256x128xbf16, #tpu.memory_space<vmem>>, %arg4: memref<1xf32, #tpu.memory_space<smem>>, %arg5: memref<8x128xf32, #tpu.memory_space<vmem>>) attributes {dimension_semantics = [#tpu.dimension_semantics<parallel>], iteration_bounds = array<i64: 1>, scalar_prefetch = 0 : i64, scratch_operands = 0 : i64, tpu.core_type = #tpu.core_type<tc>, window_params = [{transform_indices = @transform_0, window_bounds = array<i64: 8, 256>}, {pipeline_mode = #tpu.pipeline_mode<synchronous>, transform_indices = @transform_1, window_bounds = array<i64: 256, 128>}, {pipeline_mode = #tpu.pipeline_mode<synchronous>, transform_indices = @transform_2, window_bounds = array<i64: 256, 128>}, {transform_indices = @transform_3, window_bounds = array<i64: 1>}, {transform_indices = @transform_4, window_bounds = array<i64: 8, 128>}]} {
    %c0 = arith.constant 0 : index
    %c0_0 = arith.constant 0 : index
    %0 = vector.load %arg1[%c0, %c0_0] : memref<8x256xf32, #tpu.memory_space<vmem>>, vector<8x256xf32>
    %1 = arith.truncf %0 : vector<8x256xf32> to vector<8x256xbf16>
    %2 = arith.extf %1 : vector<8x256xbf16> to vector<8x256xf32>
    %3 = arith.subf %0, %2 : vector<8x256xf32>
    %4 = arith.truncf %3 : vector<8x256xf32> to vector<8x256xbf16>
    %c0_1 = arith.constant 0 : index
    %c0_2 = arith.constant 0 : index
    %5 = vector.load %arg2[%c0_1, %c0_2] : memref<256x128xbf16, #tpu.memory_space<vmem>>, vector<256x128xbf16>
    %c0_3 = arith.constant 0 : index
    %c0_4 = arith.constant 0 : index
    %6 = vector.load %arg3[%c0_3, %c0_4] : memref<256x128xbf16, #tpu.memory_space<vmem>>, vector<256x128xbf16>
    %cst = arith.constant dense<0.000000e+00> : vector<8x128xf32>
    %7 = tpu.matmul %1, %5, %cst {dimension_numbers = #tpu.dot_dimension_numbers<[1], [0], [0], [1], [0, 0, 1, 1], [], []>} : vector<8x256xbf16>, vector<256x128xbf16>, vector<8x128xf32> -> vector<8x128xf32>
    %cst_5 = arith.constant dense<0.000000e+00> : vector<8x128xf32>
    %8 = tpu.matmul %4, %5, %cst_5 {dimension_numbers = #tpu.dot_dimension_numbers<[1], [0], [0], [1], [0, 0, 1, 1], [], []>} : vector<8x256xbf16>, vector<256x128xbf16>, vector<8x128xf32> -> vector<8x128xf32>
    %9 = arith.addf %7, %8 : vector<8x128xf32>
    %cst_6 = arith.constant dense<0.000000e+00> : vector<8x128xf32>
    %10 = tpu.matmul %1, %6, %cst_6 {dimension_numbers = #tpu.dot_dimension_numbers<[1], [0], [0], [1], [0, 0, 1, 1], [], []>} : vector<8x256xbf16>, vector<256x128xbf16>, vector<8x128xf32> -> vector<8x128xf32>
    %11 = arith.addf %9, %10 : vector<8x128xf32>
    %cst_7 = arith.constant dense<0.000000e+00> : vector<8x128xf32>
    %12 = tpu.matmul %4, %6, %cst_7 {dimension_numbers = #tpu.dot_dimension_numbers<[1], [0], [0], [1], [0, 0, 1, 1], [], []>} : vector<8x256xbf16>, vector<256x128xbf16>, vector<8x128xf32> -> vector<8x128xf32>
    %13 = arith.addf %11, %12 : vector<8x128xf32>
    %c0_8 = arith.constant 0 : index
    %14 = memref.load %arg4[%c0_8] : memref<1xf32, #tpu.memory_space<smem>>
    %15 = vector.broadcast %14 : f32 to vector<8x128xf32>
    %16 = arith.addf %13, %15 : vector<8x128xf32>
    %17 = math.tanh %16 : vector<8x128xf32>
    %cst_9 = arith.constant 5.000000e-01 : f32
    %18 = vector.broadcast %cst_9 : f32 to vector<8x128xf32>
    %19 = arith.mulf %18, %17 : vector<8x128xf32>
    %cst_10 = arith.constant 5.000000e-01 : f32
    %20 = vector.broadcast %cst_10 : f32 to vector<8x128xf32>
    %21 = arith.addf %19, %20 : vector<8x128xf32>
    %c0_11 = arith.constant 0 : index
    %c0_12 = arith.constant 0 : index
    %22 = vector.load %arg5[%c0_11, %c0_12] : memref<8x128xf32, #tpu.memory_space<vmem>>, vector<8x128xf32>
    tpu.vector_store %arg5[%c0_11, %c0_12], %21 {strides = array<i32>} : memref<8x128xf32, #tpu.memory_space<vmem>>, vector<8x128xf32>,
    return
  }
  func.func @transform_0(%arg0: i32) -> (i32, i32) {
    %c0_i32 = arith.constant 0 : i32
    %c0_i32_0 = arith.constant 0 : i32
    return %arg0, %c0_i32 : i32, i32
  }
  func.func @transform_1(%arg0: i32) -> (i32, i32) {
    %c0_i32 = arith.constant 0 : i32
    %c0_i32_0 = arith.constant 0 : i32
    %c0_i32_1 = arith.constant 0 : i32
    return %c0_i32, %c0_i32_0 : i32, i32
  }
  func.func @transform_2(%arg0: i32) -> (i32, i32) {
    %c0_i32 = arith.constant 0 : i32
    %c0_i32_0 = arith.constant 0 : i32
    %c0_i32_1 = arith.constant 0 : i32
    return %c0_i32, %c0_i32_0 : i32, i32
  }
  func.func @transform_3(%arg0: i32) -> i32 {
    %c0_i32 = arith.constant 0 : i32
    %c0_i32_0 = arith.constant 0 : i32
    return %c0_i32 : i32
  }
  func.func @transform_4(%arg0: i32) -> (i32, i32) {
    %c0_i32 = arith.constant 0 : i32
    %c0_i32_0 = arith.constant 0 : i32
    return %arg0, %c0_i32 : i32, i32
  }
}

</mosaic_0001>

<bundles_post_ra>
// kernel: tpu_custom_call.1
= control target key start
LH: loop header
LB: loop body
LE: loop exit
PB: predicated region body
PF: predicated region fallthrough
CT: control target
= control target key end

     0   :  { %10 = vsyncpa [#allocation4], 0  ;;  %s857_s0 = inlined_call_operand.hbm [shape: f32[8,256], index: 0, kind: input, shape index: {}]   ;;  %s858_s1 = inlined_call_operand.hbm [shape: bf16[256,128], index: 1, kind: input, shape index: {}]   ;;  %s859_s2 = inlined_call_operand.hbm [shape: bf16[256,128], index: 2, kind: input, shape index: {}]   ;;  %s860_s3 = inlined_call_operand.<no memory space> [shape: f32[1], index: 3, kind: input, shape index: {}]   ;;  %s861_s4 = inlined_call_operand.hbm [shape: f32[8,128], index: 4, kind: output, shape index: {}]  }
   0x1   :  { %11 = vsyncpa [#allocation7], 0 }
   0x2   :  { %12 = vsyncpa [#allocation5], 0  ;;  %s764_s15 = smov [#allocation6]   ;;  %s670_s19 = scalar_lea.hbm %s858_s1, 2048 }
   0x3   :  { %s28_s16 = sshll.u32 %s764_s15, 4  ;;  %p671_p0 = scmp.ne.s32.totalorder %s858_s1, %s670_s19  ;;  %s29_s16 = int_to_ptr.vmem [resolvable:$true] %s28_s16 }
   0x4   :  { %p674_p1 = scmp.lt.u32.totalorder %s670_s19, %s858_s1 }
   0x6   :  { %p676_p2 = pnand %p674_p1, %p671_p0 }
   0x8   :  { %679 = shalt.err (!%p676_p2)
}
   0x9   :  { %s680_s24 = scalar_lea.vmem %s29_s16, 2048  ;;  %p685_p4 = scmp.lt.s32.totalorder %s29_s16, %s29_s16 }
   0xa   :  { %p681_p3 = scmp.ne.s32.totalorder %s29_s16, %s680_s24  ;;  %p686_p5 = scmp.lt.s32.totalorder %s680_s24, %s680_s24 }
   0xc   :  { %p687_p6 = por %p686_p5, %p685_p4 }
   0xe   :  { %p688_p7 = pnand %p687_p6, %p681_p3 }
  0x10   :  { %691 = shalt.err (!%p688_p7)
}
  0x11   :  { %s765_s25 = smov 64   ;;  %s766_s26 = smov 4  }
  0x12   :  { %34 = dma.hbm_to_vmem [thread:$0]  %s858_s1, 2048, %s29_s16, [#allocation7], %s765_s25, %s765_s25, %s766_s26  }
  0x13   :  { %s767_s29 = smov [#allocation3]   ;;  %s768_s5 = smov [#allocation8]  }
  0x14   :  { %s19_s30 = sshll.u32 %s767_s29, 4  ;;  %s40_s6 = sshll.u32 %s768_s5, 4  ;;  %s20_s30 = int_to_ptr.vmem [resolvable:$true] %s19_s30  ;;  %s41_s6 = int_to_ptr.vmem [resolvable:$true] %s40_s6 }
  0x15   :  { %s692_s9 = scalar_lea.hbm %s857_s0, 256 }
  0x16   :  { %p693_p8 = scmp.ne.s32.totalorder %s857_s0, %s692_s9  ;;  %p696_p9 = scmp.lt.u32.totalorder %s692_s9, %s857_s0 }
  0x18   :  { %p698_p10 = pnand %p696_p9, %p693_p8 }
  0x1a   :  { %701 = shalt.err (!%p698_p10)
}
  0x1b   :  { %s702_s1 = scalar_lea.vmem %s20_s30, 256  ;;  %p707_p12 = scmp.lt.s32.totalorder %s20_s30, %s20_s30 }
  0x1c   :  { %p703_p11 = scmp.ne.s32.totalorder %s20_s30, %s702_s1  ;;  %p708_p13 = scmp.lt.s32.totalorder %s702_s1, %s702_s1 }
  0x1e   :  { %p709_p0 = por %p708_p13, %p707_p12 }
  0x20   :  { %p710_p1 = pnand %p709_p0, %p703_p11 }
  0x22   :  { %713 = shalt.err (!%p710_p1)
}
  0x23   :  { %22 = dma.hbm_to_vmem [thread:$0]  %s857_s0, 256, %s20_s30, [#allocation4]  }
  0x24   :  { %s714_s18 = scalar_lea.hbm %s859_s2, 2048 }
  0x25   :  { %p715_p2 = scmp.ne.s32.totalorder %s859_s2, %s714_s18  ;;  %p718_p3 = scmp.lt.u32.totalorder %s714_s18, %s859_s2 }
  0x27   :  { %p720_p4 = pnand %p718_p3, %p715_p2 }
  0x29   :  { %723 = shalt.err (!%p720_p4)
}
  0x2a   :  { %s724_s23 = scalar_lea.vmem %s41_s6, 2048  ;;  %p729_p6 = scmp.lt.s32.totalorder %s41_s6, %s41_s6 }
  0x2b   :  { %p725_p5 = scmp.ne.s32.totalorder %s41_s6, %s724_s23  ;;  %p730_p7 = scmp.lt.s32.totalorder %s724_s23, %s724_s23 }
  0x2d   :  { %p731_p8 = por %p730_p7, %p729_p6 }
  0x2f   :  { %p732_p9 = pnand %p731_p8, %p725_p5 }
  0x31   :  { %735 = shalt.err (!%p732_p9)
}
  0x32   :  { %46 = dma.hbm_to_vmem [thread:$0]  %s859_s2, 2048, %s41_s6, [#allocation7], %s765_s25, %s765_s25, %s766_s26  }
  0x33   :  { %758 = dma.done.wait [#allocation4], 256  }
  0x34   :  { %759 = vsyncadd [#allocation4], 4294967040 }
  0x35   :  { %760 = dma.done.wait [#allocation7], 4096  }
  0x36   :  { %761 = vsyncadd [#allocation7], 4294963200  ;;  %v636_v0 = vld [vmem:[#allocation6 + $0x40] sm:$0xff]   ;;  %v638_v2 = vld [vmem:[#allocation6 + $0x48] sm:$0xff]   ;;  %s769_s26 = smov [#allocation9]  }
  0x37   :  { %v637_v1 = vld [vmem:[#allocation6] sm:$0xff]   ;;  %542 = vmatprep.subr.bf16.mxu0 %v636_v0  ;;  %564 = vmatprep.subr.bf16.mxu1 %v636_v0  ;;  %v639_v3 = vld [vmem:[#allocation6 + $0x8] sm:$0xff]   ;;  %v640_v4 = vld [vmem:[#allocation6 + $0x50] sm:$0xff]   ;;  %v488_v0 = vstv %s860_s3  ;;  %s500_s27 = sshll.u32 %s769_s26, 4  ;;  %s501_s27 = int_to_ptr.vmem [resolvable:$true] %s500_s27 }
  0x38   :  { %543 = vmatpush3.bf16.msra.mxu0 %v637_v1  ;;  %565 = vmatpush3.bf16.msra.mxu1 %v637_v1  ;;  %v641_v5 = vld [vmem:[#allocation6 + $0x10] sm:$0xff]   ;;  %v642_v6 = vld [vmem:[#allocation6 + $0x58] sm:$0xff]   ;;  %v644_v8 = vld [vmem:[#allocation6 + $0x60] sm:$0xff]   ;;  %s736_s28 = scalar_lea.vmem %s501_s27, 128  ;;  %p741_p11 = scmp.lt.s32.totalorder %s501_s27, %s501_s27 }
  0x39   :  { %544 = vmatprep.subr.bf16.mxu0 %v638_v2  ;;  %566 = vmatprep.subr.bf16.mxu1 %v638_v2  ;;  %v643_v7 = vld [vmem:[#allocation6 + $0x18] sm:$0xff]   ;;  %v645_v9 = vld [vmem:[#allocation6 + $0x20] sm:$0xff]   ;;  %v646_v10 = vld [vmem:[#allocation6 + $0x68] sm:$0xff]   ;;  %p737_p10 = scmp.ne.s32.totalorder %s501_s27, %s736_s28  ;;  %p742_p12 = scmp.lt.s32.totalorder %s736_s28, %s736_s28 }
  0x3a   :  { %v60_v11 = vld [vmem:[#allocation3 + $0x8] sm:$0xff]  ;;  %v59_v12 = vld [vmem:[#allocation3] sm:$0xff]  ;;  %v647_v15 = vld [vmem:[#allocation6 + $0x28] sm:$0xff]  }
  0x3b   :  { %v62_v13 = vpack.c.bf16 %v60_v11, %v60_v11  ;;  %v837_v14 = vpack.c.bf16 %v59_v12, %v59_v12  ;;  %v648_v17 = vld [vmem:[#allocation6 + $0x70] sm:$0xff]   ;;  %v650_v22 = vld [vmem:[#allocation6 + $0x78] sm:$0xff]   ;;  %v652_v25 = vld [vmem:[#allocation8 + $0x40] sm:$0xff]   ;;  %p743_p13 = por %p742_p12, %p741_p11 }
  0x3c   :  { %545 = vmatpush3.bf16.msra.mxu0 %v639_v3  ;;  %567 = vmatpush3.bf16.msra.mxu1 %v639_v3  ;;  %v649_v20 = vld [vmem:[#allocation6 + $0x30] sm:$0xff]   ;;  %v651_v24 = vld [vmem:[#allocation6 + $0x38] sm:$0xff]   ;;  %v653_v27 = vld [vmem:[#allocation8] sm:$0xff]  }
  0x3d   :  { %546 = vmatprep.subr.bf16.mxu0 %v640_v4  ;;  %568 = vmatprep.subr.bf16.mxu1 %v640_v4  ;;  %v64_v16 = vunpack.c.l.bf16 %v62_v13  ;;  %v63_v19 = vunpack.c.l.bf16 %v837_v14  ;;  %v654_v28 = vld [vmem:[#allocation8 + $0x48] sm:$0xff]   ;;  %v656_v30 = vld [vmem:[#allocation8 + $0x50] sm:$0xff]   ;;  %v658_v32 = vld [vmem:[#allocation8 + $0x58] sm:$0xff]   ;;  %p744_p0 = pnand %p743_p13, %p737_p10 }
  0x3e   :  { %301 = vmatprep.mubr.bf16.mxu1 %v62_v13  ;;  %v655_v29 = vld [vmem:[#allocation8 + $0x8] sm:$0xff]   ;;  %v657_v31 = vld [vmem:[#allocation8 + $0x10] sm:$0xff]   ;;  %v659_v33 = vld [vmem:[#allocation8 + $0x18] sm:$0xff]  }
  0x3f   :  { %v66_v18 = vsub.f32 %v60_v11, %v64_v16  ;;  %v65_v23 = vsub.f32 %v59_v12, %v63_v19  ;;  %v660_v34 = vld [vmem:[#allocation8 + $0x60] sm:$0xff]   ;;  %v662_v36 = vld [vmem:[#allocation8 + $0x68] sm:$0xff]   ;;  %v664_v38 = vld [vmem:[#allocation8 + $0x70] sm:$0xff]  }
  0x40   :  { %547 = vmatpush3.bf16.msra.mxu0 %v641_v5  ;;  %569 = vmatpush3.bf16.msra.mxu1 %v641_v5  ;;  %v661_v35 = vld [vmem:[#allocation8 + $0x20] sm:$0xff]   ;;  %v663_v37 = vld [vmem:[#allocation8 + $0x28] sm:$0xff]   ;;  %v665_v39 = vld [vmem:[#allocation8 + $0x30] sm:$0xff]  }
  0x41   :  { %548 = vmatprep.subr.bf16.mxu0 %v642_v6  ;;  %570 = vmatprep.subr.bf16.mxu1 %v642_v6  ;;  %v68_v21 = vpack.c.bf16 %v66_v18, %v66_v18  ;;  %v67_v26 = vpack.c.bf16 %v65_v23, %v65_v23  ;;  %v666_v40 = vld [vmem:[#allocation8 + $0x78] sm:$0xff]  }
  0x42   :  { %v667_v41 = vld [vmem:[#allocation8 + $0x38] sm:$0xff]  }
  0x43   :  { %261 = vmatprep.mubr.bf16.mxu0 %v68_v21 }
  0x44   :  { %549 = vmatpush3.bf16.msra.mxu0 %v643_v7  ;;  %571 = vmatpush3.bf16.msra.mxu1 %v643_v7 }
  0x45   :  { %550 = vmatprep.subr.bf16.mxu0 %v644_v8  ;;  %572 = vmatprep.subr.bf16.mxu1 %v644_v8 }
  0x48   :  { %551 = vmatpush3.bf16.msra.mxu0 %v645_v9  ;;  %573 = vmatpush3.bf16.msra.mxu1 %v645_v9 }
  0x49   :  { %552 = vmatprep.subr.bf16.mxu0 %v646_v10  ;;  %574 = vmatprep.subr.bf16.mxu1 %v646_v10 }
  0x4c   :  { %553 = vmatpush3.bf16.msra.mxu0 %v647_v15  ;;  %575 = vmatpush3.bf16.msra.mxu1 %v647_v15 }
  0x4d   :  { %554 = vmatprep.subr.bf16.mxu0 %v648_v17  ;;  %576 = vmatprep.subr.bf16.mxu1 %v648_v17 }
  0x50   :  { %555 = vmatpush3.bf16.msra.mxu0 %v649_v20  ;;  %577 = vmatpush3.bf16.msra.mxu1 %v649_v20 }
  0x51   :  { %556 = vmatprep.subr.bf16.mxu0 %v650_v22  ;;  %578 = vmatprep.subr.bf16.mxu1 %v650_v22 }
  0x54   :  { %557 = vmatpush3.bf16.msra.mxu0 %v651_v24  ;;  %579 = vmatpush3.bf16.msra.mxu1 %v651_v24 }
  0x55   :  { %586 = vmatprep.subr.bf16.mxu0 %v652_v25  ;;  %608 = vmatprep.subr.bf16.mxu1 %v652_v25 }
  0x57   :  { %262 = vmatmul.mubr.bf16.vlgmr.msra.gmra.mrb[0].mxu0 %v67_v26  ;;  %302 = vmatmul.mubr.bf16.vlgmr.msra.gmra.mrb[0].mxu1 %v837_v14 }
  0x58   :  { %587 = vmatpush3.bf16.msra.mxu0 %v653_v27  ;;  %609 = vmatpush3.bf16.msra.mxu1 %v653_v27 }
  0x59   :  { %588 = vmatprep.subr.bf16.mxu0 %v654_v28  ;;  %610 = vmatprep.subr.bf16.mxu1 %v654_v28 }
  0x5a   :  { %437 = vmatprep.mubr.bf16.mxu0 %v62_v13  ;;  %478 = vmatprep.mubr.bf16.mxu1 %v68_v21 }
  0x5c   :  { %589 = vmatpush3.bf16.msra.mxu0 %v655_v29  ;;  %611 = vmatpush3.bf16.msra.mxu1 %v655_v29 }
  0x5d   :  { %590 = vmatprep.subr.bf16.mxu0 %v656_v30  ;;  %612 = vmatprep.subr.bf16.mxu1 %v656_v30 }
  0x60   :  { %591 = vmatpush3.bf16.msra.mxu0 %v657_v31  ;;  %613 = vmatpush3.bf16.msra.mxu1 %v657_v31 }
  0x61   :  { %592 = vmatprep.subr.bf16.mxu0 %v658_v32  ;;  %614 = vmatprep.subr.bf16.mxu1 %v658_v32 }
  0x64   :  { %593 = vmatpush3.bf16.msra.mxu0 %v659_v33  ;;  %615 = vmatpush3.bf16.msra.mxu1 %v659_v33 }
  0x65   :  { %594 = vmatprep.subr.bf16.mxu0 %v660_v34  ;;  %616 = vmatprep.subr.bf16.mxu1 %v660_v34 }
  0x68   :  { %595 = vmatpush3.bf16.msra.mxu0 %v661_v35  ;;  %617 = vmatpush3.bf16.msra.mxu1 %v661_v35 }
  0x69   :  { %596 = vmatprep.subr.bf16.mxu0 %v662_v36  ;;  %618 = vmatprep.subr.bf16.mxu1 %v662_v36 }
  0x6c   :  { %597 = vmatpush3.bf16.msra.mxu0 %v663_v37  ;;  %619 = vmatpush3.bf16.msra.mxu1 %v663_v37 }
  0x6d   :  { %598 = vmatprep.subr.bf16.mxu0 %v664_v38  ;;  %620 = vmatprep.subr.bf16.mxu1 %v664_v38 }
  0x70   :  { %599 = vmatpush3.bf16.msra.mxu0 %v665_v39  ;;  %621 = vmatpush3.bf16.msra.mxu1 %v665_v39 }
  0x71   :  { %600 = vmatprep.subr.bf16.mxu0 %v666_v40  ;;  %622 = vmatprep.subr.bf16.mxu1 %v666_v40 }
  0x74   :  { %601 = vmatpush3.bf16.msra.mxu0 %v667_v41  ;;  %623 = vmatpush3.bf16.msra.mxu1 %v667_v41 }
  0x77   :  { %438 = vmatmul.mubr.bf16.vlgmr.msra.gmra.mrb[4].mxu0 %v837_v14  ;;  %479 = vmatmul.mubr.bf16.vlgmr.msra.gmra.mrb[4].mxu1 %v67_v26 }
 0x12a   :  { %v558_v42 = vpop.f32.mrb[0].mxu0  ;;  %v580_v43 = vpop.f32.mrb[0].mxu1 }
 0x12b   :  { %v559_v44 = vpop.f32.mrb[1].mxu0  ;;  %v581_v45 = vpop.f32.mrb[1].mxu1 }
 0x12c   :  { %v560_v46 = vadd.f32 %v559_v44, %v558_v42  ;;  %v582_v47 = vadd.f32 %v581_v45, %v580_v43  ;;  %v561_v48 = vpop.f32.mrb[2].mxu0  ;;  %v583_v49 = vpop.f32.mrb[2].mxu1 }
 0x12d   :  { %v562_v50 = vpop.f32.mrb[3].mxu0  ;;  %v584_v51 = vpop.f32.mrb[3].mxu1 }
 0x12e   :  { %v304_v52 = vadd.f32 %v582_v47, %v560_v46 }
 0x14a   :  { %v602_v53 = vpop.f32.mrb[4].mxu0  ;;  %v624_v54 = vpop.f32.mrb[4].mxu1 }
 0x14b   :  { %v603_v55 = vpop.f32.mrb[5].mxu0  ;;  %v625_v56 = vpop.f32.mrb[5].mxu1 }
 0x14c   :  { %v604_v57 = vadd.f32 %v603_v55, %v602_v53  ;;  %v626_v58 = vadd.f32 %v625_v56, %v624_v54  ;;  %v605_v59 = vpop.f32.mrb[6].mxu0  ;;  %v627_v60 = vpop.f32.mrb[6].mxu1 }
 0x14d   :  { %v606_v61 = vpop.f32.mrb[7].mxu0  ;;  %v628_v62 = vpop.f32.mrb[7].mxu1 }
 0x14e   :  { %v445_v63 = vadd.f32 %v604_v57, %v304_v52 }
 0x150   :  { %v486_v1 = vadd.f32 %v626_v58, %v445_v63 }
 0x152   :  { %v489_v2 = vadd.f32 %v488_v0, %v486_v1 }
 0x154   :  { %668 = vtanh.f32 %v489_v2 }
 0x15e   :  { %v669_v3 = vpop.eup %668 }
 0x15f   :  { %v491_v4 = vmul.f32 0.5, %v669_v3 }
 0x161   :  { %v492_v5 = vadd.f32 0.5, %v491_v4 }
 0x163   :  { %493 = vst [vmem:[#allocation9] sm:$0xff] %v492_v5 }
 0x164   :  { %747 = shalt.err (!%p744_p0)
}
 0x165   :  { %s748_s3 = scalar_lea.hbm %s861_s4, 128 }
 0x166   :  { %p749_p1 = scmp.ne.s32.totalorder %s861_s4, %s748_s3  ;;  %p752_p2 = scmp.lt.u32.totalorder %s748_s3, %s861_s4 }
 0x168   :  { %p754_p3 = pnand %p752_p2, %p749_p1 }
 0x16a   :  { %757 = shalt.err (!%p754_p3)
}
 0x16b   :  { %503 = dma.vmem_to_hbm [thread:$0]  %s501_s27, 128, %s861_s4, [#allocation5]  }
 0x16c   :  { %762 = dma.done.wait [#allocation5], 128  }
 0x16d   :  { %763 = vsyncadd [#allocation5], 4294967168 }
 0x16e   :  { %507 = vsyncpa [#allocation4], 1 }
 0x16f   :  { %508 = vsyncpa [#allocation7], 1 }
 0x170   :  { %509 = vsyncpa [#allocation5], 1 }

</bundles_post_ra>
